<compile_context>
chip_gen: v7x
topology: tpu7x:2x2x1
jax: 0.10.0
libtpu: 0.0.40
codegen_flags: <defaults>
</compile_context>

<pallas_src>
import functools

import jax
import jax.numpy as jnp
from jax import lax
from jax.experimental import pallas as pl
from jax.experimental.pallas import tpu as pltpu
from jax.scipy.linalg import block_diag

LN_EPS = 1e-5  # torch.nn.LayerNorm default


def plddt_head_kernel(*refs, packed):
    if packed:
        (x_ref, m2_ref, w0_ref, b0_ref, w1_ref, b1_ref, wl_ref, bl_ref,
         out_ref) = refs
    else:
        (x_ref, w0_ref, b0_ref, w1_ref, b1_ref, wl_ref, bl_ref,
         out_ref) = refs

    x = x_ref[...].astype(jnp.float32)

    if packed:
        # Packed LayerNorm: each kernel row holds P residues side-by-side in
        # F-lane segments.  Coarse centering (exact f32) + one bf16 MXU matmul
        # against a segment-averaging matrix yields per-segment mean /
        # mean-of-squares already broadcast back over the segment lanes.
        m0 = jnp.mean(x, axis=-1, keepdims=True)
        xc = x - m0
        s_in = jnp.concatenate([xc, xc * xc], axis=-1).astype(m2_ref.dtype)
        stats = jnp.dot(s_in, m2_ref[...], preferred_element_type=jnp.float32)
        half = stats.shape[-1] // 2
        mu = stats[:, :half]
        var = jnp.maximum(stats[:, half:] - mu * mu, 0.0)
        xn = ((xc - mu) * lax.rsqrt(var + LN_EPS)).astype(w0_ref.dtype)
    else:
        mu = jnp.mean(x, axis=-1, keepdims=True)
        xc = x - mu
        var = jnp.mean(xc * xc, axis=-1, keepdims=True)
        xn = (xc * lax.rsqrt(var + LN_EPS)).astype(w0_ref.dtype)

    # act_0 + ReLU  (bf16 operands, f32 accumulation on the MXU; the LN affine
    # has been folded into w0 / b0 by the wrapper)
    h0 = jnp.dot(xn, w0_ref[...], preferred_element_type=jnp.float32) + b0_ref[...]
    h0 = jnp.maximum(h0, 0.0).astype(w1_ref.dtype)

    # act_1 + ReLU
    h1 = jnp.dot(h0, w1_ref[...], preferred_element_type=jnp.float32) + b1_ref[...]
    h1 = jnp.maximum(h1, 0.0).astype(wl_ref.dtype)

    # logits
    out_ref[...] = (jnp.dot(h1, wl_ref[...], preferred_element_type=jnp.float32)
                    + bl_ref[...]).astype(out_ref.dtype)


def _round_up(n, m):
    return ((n + m - 1) // m) * m


def _block_diag(w, p):
    return block_diag(*([w] * p)) if p > 1 else w


def predicted_lddt_head(x, params, *, block_rows=4096, matmul_dtype=jnp.bfloat16):
    """x: [N_res, num_feat_1d] float32.  params: dict of (in,out)-layout weights."""
    N, F = x.shape
    C = params["w0"].shape[1]
    B = params["wl"].shape[1]

    # ---- Fold the LayerNorm affine into the first Linear (trace-time) ----
    ln_w = params["ln_w"].reshape(F, 1).astype(jnp.float32)
    ln_b = params["ln_b"].reshape(1, F).astype(jnp.float32)
    w0f = params["w0"].astype(jnp.float32)
    w0 = ln_w * w0f
    b0 = ln_b @ w0f + params["b0"].astype(jnp.float32).reshape(1, C)
    w1 = params["w1"].astype(jnp.float32)
    b1 = params["b1"].astype(jnp.float32).reshape(1, C)
    wl = params["wl"].astype(jnp.float32)
    bl = params["bl"].astype(jnp.float32).reshape(1, B)

    # ---- Row-packing factor (fill the 256-wide v6e/v7x MXU) --------------
    P = 1
    for p in (4, 2):
        if p * F <= 128 and p * C <= 256:
            P = p
            break

    if P > 1:
        pad = (-N) % P
        if pad:
            x = jnp.pad(x, ((0, pad), (0, 0)))
        rows = (N + pad) // P
        xk = x.reshape(rows, P * F)              # contiguous row-major re-view
        w0k = _block_diag(w0, P)                 # (P*F, P*C)
        w1k = _block_diag(w1, P)                 # (P*C, P*C)
        wlk = _block_diag(wl, P)                 # (P*C, P*B)
        b0k = jnp.tile(b0, (1, P))
        b1k = jnp.tile(b1, (1, P))
        blk = jnp.tile(bl, (1, P))
        # Segment-averaging matrix: [xc, xc^2] @ m2 -> per-residue mean /
        # mean-of-squares broadcast over that residue's F lanes.
        seg = jnp.arange(P * F) // F
        mavg = (seg[:, None] == seg[None, :]).astype(jnp.float32) / F
        m2 = block_diag(mavg, mavg)              # (2*P*F, 2*P*F)
        out_cols = P * B
    else:
        rows, xk = N, x
        w0k, w1k, wlk, b0k, b1k, blk = w0, w1, wl, b0, b1, bl
        m2 = None
        out_cols = B

    # Reduced-precision matmul operands (f32 accumulation inside the kernel).
    w0k = w0k.astype(matmul_dtype)
    w1k = w1k.astype(matmul_dtype)
    wlk = wlk.astype(matmul_dtype)

    # ---- Row tiling: big tiles amortize per-grid-step overhead -----------
    bp = max(block_rows // P, 8)
    bp = min(_round_up(bp, 8), _round_up(rows, 8))
    grid = (pl.cdiv(rows, bp),)                  # partial tail block is masked

    Wp = xk.shape[1]                             # packed input width
    Cp = w1k.shape[0]                            # packed hidden width

    # Small constant operands: whole-array, non-blocked VMEM residency.
    wspec = pl.BlockSpec(memory_space=pltpu.MemorySpace.VMEM)
    in_specs = [pl.BlockSpec((bp, Wp), lambda i: (i, 0))]
    args = [xk]
    if P > 1:
        in_specs.append(wspec)
        args.append(m2.astype(matmul_dtype))
    in_specs += [wspec] * 6
    args += [w0k, b0k, w1k, b1k, wlk, blk]

    flops = 2 * rows * (Wp * w0k.shape[1] + Cp * Cp + Cp * out_cols)
    if P > 1:
        flops += 2 * rows * (2 * Wp) * (2 * Wp)
    bytes_accessed = (4 * rows * (Wp + out_cols)
                      + 2 * (w0k.size + w1k.size + wlk.size
                             + (m2.size if P > 1 else 0))
                      + 4 * (b0k.size + b1k.size + blk.size))

    out = pl.pallas_call(
        functools.partial(plddt_head_kernel, packed=(P > 1)),
        out_shape=jax.ShapeDtypeStruct((rows, out_cols), jnp.float32),
        grid_spec=pltpu.PrefetchScalarGridSpec(
            num_scalar_prefetch=0,
            grid=grid,
            in_specs=in_specs,
            out_specs=pl.BlockSpec((bp, out_cols), lambda i: (i, 0)),
        ),
        compiler_params=pltpu.CompilerParams(
            dimension_semantics=("parallel",),
            vmem_limit_bytes=40 * 1024 * 1024,
        ),
        cost_estimate=pl.CostEstimate(
            flops=int(flops),
            transcendentals=int(rows * P),
            bytes_accessed=int(bytes_accessed)),
    )(*args)

    if P > 1:
        # (rows, P*B) -> (rows*P, B) is a contiguous row-major re-view;
        # the tail slice drops the (at most P-1) padded residues.
        out = out.reshape(rows * P, B)[:N]
    return out


def reference_forward(x, params):
    mean = jnp.mean(x, axis=-1, keepdims=True)
    var = jnp.mean((x - mean) ** 2, axis=-1, keepdims=True)
    y = (x - mean) * lax.rsqrt(var + LN_EPS) * params["ln_w"] + params["ln_b"]
    h0 = jnp.maximum(y @ params["w0"] + params["b0"], 0.0)
    h1 = jnp.maximum(h0 @ params["w1"] + params["b1"], 0.0)
    return h1 @ params["wl"] + params["bl"]


def init_params(key, num_feat_1d, num_channels, num_bins):
    ks = jax.random.split(key, 8)
    s = lambda k, shape, scale: jax.random.normal(k, shape, jnp.float32) * scale
    return {
        "ln_w": 1.0 + s(ks[6], (1, num_feat_1d), 0.1),
        "ln_b": s(ks[7], (1, num_feat_1d), 0.1),
        "w0": s(ks[0], (num_feat_1d, num_channels), 0.05),
        "b0": s(ks[1], (1, num_channels), 0.05),
        "w1": s(ks[2], (num_channels, num_channels), 0.05),
        "b1": s(ks[3], (1, num_channels), 0.05),
        "wl": s(ks[4], (num_channels, num_bins), 0.05),
        "bl": s(ks[5], (1, num_bins), 0.05),
    }


if __name__ == "__main__":
    # Small shapes consistent with the module: num_feat_1d=32, num_channels=64,
    # num_bins=50 (AF2 default bin count).
    NUM_FEAT_1D, NUM_CHANNELS, NUM_BINS = 32, 64, 50

    key = jax.random.PRNGKey(0)
    kx, kp, kx2 = jax.random.split(key, 3)
    params = init_params(kp, NUM_FEAT_1D, NUM_CHANNELS, NUM_BINS)

    # Case 1: N_res=60 (single grid step, partial packed block).
    x = jax.random.normal(kx, (60, NUM_FEAT_1D), jnp.float32)
    logits = jax.block_until_ready(predicted_lddt_head(x, params))
    ref = reference_forward(x, params)
    assert logits.shape == (60, NUM_BINS)
    err = float(jnp.max(jnp.abs(logits - ref)))
    assert jnp.allclose(logits, ref, atol=2e-2, rtol=2e-2), err

    # Case 2: N_res=301 with a small tile -> multi-step grid, residue padding
    # to a multiple of the packing factor, and a partial (masked) tail block.
    x2 = jax.random.normal(kx2, (301, NUM_FEAT_1D), jnp.float32)
    logits2 = jax.block_until_ready(
        predicted_lddt_head(x2, params, block_rows=64))
    ref2 = reference_forward(x2, params)
    assert logits2.shape == (301, NUM_BINS)
    err2 = float(jnp.max(jnp.abs(logits2 - ref2)))
    assert jnp.allclose(logits2, ref2, atol=2e-2, rtol=2e-2), err2

    # TODO(synk): loss() / lddt() is training-only (CrossEntropy + lddt score),
    # not part of forward(); it is not implemented here.
    print("KERNEL_OK")
</pallas_src>

<mosaic_0001>
module attributes {stable_mosaic.version = 11 : i64} {
  func.func @plddt_head_kernel(%arg0: i32, %arg1: memref<16x128xf32, #tpu.memory_space<vmem>>, %arg2: memref<256x256xbf16, #tpu.memory_space<vmem>>, %arg3: memref<128x256xbf16, #tpu.memory_space<vmem>>, %arg4: memref<1x256xf32, #tpu.memory_space<vmem>>, %arg5: memref<256x256xbf16, #tpu.memory_space<vmem>>, %arg6: memref<1x256xf32, #tpu.memory_space<vmem>>, %arg7: memref<256x200xbf16, #tpu.memory_space<vmem>>, %arg8: memref<1x200xf32, #tpu.memory_space<vmem>>, %arg9: memref<16x200xf32, #tpu.memory_space<vmem>>) attributes {dimension_semantics = [#tpu.dimension_semantics<parallel>], iteration_bounds = array<i64: 1>, scalar_prefetch = 0 : i64, scratch_operands = 0 : i64, tpu.core_type = #tpu.core_type<tc>, window_params = [{transform_indices = @transform_0, window_bounds = array<i64: 16, 128>}, {pipeline_mode = #tpu.pipeline_mode<synchronous>, transform_indices = @transform_1, window_bounds = array<i64: 256, 256>}, {pipeline_mode = #tpu.pipeline_mode<synchronous>, transform_indices = @transform_2, window_bounds = array<i64: 128, 256>}, {pipeline_mode = #tpu.pipeline_mode<synchronous>, transform_indices = @transform_3, window_bounds = array<i64: 1, 256>}, {pipeline_mode = #tpu.pipeline_mode<synchronous>, transform_indices = @transform_4, window_bounds = array<i64: 256, 256>}, {pipeline_mode = #tpu.pipeline_mode<synchronous>, transform_indices = @transform_5, window_bounds = array<i64: 1, 256>}, {pipeline_mode = #tpu.pipeline_mode<synchronous>, transform_indices = @transform_6, window_bounds = array<i64: 256, 200>}, {pipeline_mode = #tpu.pipeline_mode<synchronous>, transform_indices = @transform_7, window_bounds = array<i64: 1, 200>}, {transform_indices = @transform_8, window_bounds = array<i64: 16, 200>}]} {
    %c0 = arith.constant 0 : index
    %c0_0 = arith.constant 0 : index
    %0 = vector.load %arg1[%c0, %c0_0] : memref<16x128xf32, #tpu.memory_space<vmem>>, vector<16x128xf32>
    %cst = arith.constant dense<0.000000e+00> : vector<16xf32>
    %1 = vector.multi_reduction <add>, %0, %cst [1] : vector<16x128xf32> to vector<16xf32>
    %2 = vector.shape_cast %1 : vector<16xf32> to vector<16x1xf32>
    %cst_1 = arith.constant 1.280000e+02 : f32
    %3 = vector.broadcast %cst_1 : f32 to vector<16x1xf32>
    %4 = arith.divf %2, %3 : vector<16x1xf32>
    %5 = vector.broadcast %4 : vector<16x1xf32> to vector<16x128xf32>
    %6 = arith.subf %0, %5 : vector<16x128xf32>
    %7 = arith.mulf %6, %6 : vector<16x128xf32>
    %8 = tpu.concatenate %6, %7 in 1 : vector<16x128xf32>, vector<16x128xf32> -> vector<16x256xf32>
    %9 = arith.truncf %8 : vector<16x256xf32> to vector<16x256xbf16>
    %c0_2 = arith.constant 0 : index
    %c0_3 = arith.constant 0 : index
    %10 = vector.load %arg2[%c0_2, %c0_3] : memref<256x256xbf16, #tpu.memory_space<vmem>>, vector<256x256xbf16>
    %cst_4 = arith.constant dense<0.000000e+00> : vector<16x256xf32>
    %11 = tpu.matmul %9, %10, %cst_4 {dimension_numbers = #tpu.dot_dimension_numbers<[1], [0], [0], [1], [0, 0, 1, 1], [], []>} : vector<16x256xbf16>, vector<256x256xbf16>, vector<16x256xf32> -> vector<16x256xf32>
    %12 = vector.extract_strided_slice %11 {offsets = [0, 0], sizes = [16, 128], strides = [1, 1]} : vector<16x256xf32> to vector<16x128xf32>
    %13 = vector.extract_strided_slice %11 {offsets = [0, 128], sizes = [16, 128], strides = [1, 1]} : vector<16x256xf32> to vector<16x128xf32>
    %14 = arith.mulf %12, %12 : vector<16x128xf32>
    %15 = arith.subf %13, %14 : vector<16x128xf32>
    %cst_5 = arith.constant 0.000000e+00 : f32
    %16 = vector.broadcast %cst_5 : f32 to vector<16x128xf32>
    %17 = arith.maximumf %15, %16 : vector<16x128xf32>
    %18 = arith.subf %6, %12 : vector<16x128xf32>
    %cst_6 = arith.constant 9.99999974E-6 : f32
    %19 = vector.broadcast %cst_6 : f32 to vector<16x128xf32>
    %20 = arith.addf %17, %19 : vector<16x128xf32>
    %21 = math.rsqrt %20 : vector<16x128xf32>
    %22 = arith.mulf %18, %21 : vector<16x128xf32>
    %23 = arith.truncf %22 : vector<16x128xf32> to vector<16x128xbf16>
    %c0_7 = arith.constant 0 : index
    %c0_8 = arith.constant 0 : index
    %24 = vector.load %arg3[%c0_7, %c0_8] : memref<128x256xbf16, #tpu.memory_space<vmem>>, vector<128x256xbf16>
    %cst_9 = arith.constant dense<0.000000e+00> : vector<16x256xf32>
    %25 = tpu.matmul %23, %24, %cst_9 {dimension_numbers = #tpu.dot_dimension_numbers<[1], [0], [0], [1], [0, 0, 1, 1], [], []>} : vector<16x128xbf16>, vector<128x256xbf16>, vector<16x256xf32> -> vector<16x256xf32>
    %c0_10 = arith.constant 0 : index
    %c0_11 = arith.constant 0 : index
    %26 = vector.load %arg4[%c0_10, %c0_11] : memref<1x256xf32, #tpu.memory_space<vmem>>, vector<1x256xf32>
    %27 = vector.broadcast %26 : vector<1x256xf32> to vector<16x256xf32>
    %28 = arith.addf %25, %27 : vector<16x256xf32>
    %cst_12 = arith.constant 0.000000e+00 : f32
    %29 = vector.broadcast %cst_12 : f32 to vector<16x256xf32>
    %30 = arith.maximumf %28, %29 : vector<16x256xf32>
    %31 = arith.truncf %30 : vector<16x256xf32> to vector<16x256xbf16>
    %c0_13 = arith.constant 0 : index
    %c0_14 = arith.constant 0 : index
    %32 = vector.load %arg5[%c0_13, %c0_14] : memref<256x256xbf16, #tpu.memory_space<vmem>>, vector<256x256xbf16>
    %cst_15 = arith.constant dense<0.000000e+00> : vector<16x256xf32>
    %33 = tpu.matmul %31, %32, %cst_15 {dimension_numbers = #tpu.dot_dimension_numbers<[1], [0], [0], [1], [0, 0, 1, 1], [], []>} : vector<16x256xbf16>, vector<256x256xbf16>, vector<16x256xf32> -> vector<16x256xf32>
    %c0_16 = arith.constant 0 : index
    %c0_17 = arith.constant 0 : index
    %34 = vector.load %arg6[%c0_16, %c0_17] : memref<1x256xf32, #tpu.memory_space<vmem>>, vector<1x256xf32>
    %35 = vector.broadcast %34 : vector<1x256xf32> to vector<16x256xf32>
    %36 = arith.addf %33, %35 : vector<16x256xf32>
    %cst_18 = arith.constant 0.000000e+00 : f32
    %37 = vector.broadcast %cst_18 : f32 to vector<16x256xf32>
    %38 = arith.maximumf %36, %37 : vector<16x256xf32>
    %39 = arith.truncf %38 : vector<16x256xf32> to vector<16x256xbf16>
    %c0_19 = arith.constant 0 : index
    %c0_20 = arith.constant 0 : index
    %40 = vector.load %arg7[%c0_19, %c0_20] : memref<256x200xbf16, #tpu.memory_space<vmem>>, vector<256x200xbf16>
    %cst_21 = arith.constant dense<0.000000e+00> : vector<16x200xf32>
    %41 = tpu.matmul %39, %40, %cst_21 {dimension_numbers = #tpu.dot_dimension_numbers<[1], [0], [0], [1], [0, 0, 1, 1], [], []>} : vector<16x256xbf16>, vector<256x200xbf16>, vector<16x200xf32> -> vector<16x200xf32>
    %c0_22 = arith.constant 0 : index
    %c0_23 = arith.constant 0 : index
    %42 = vector.load %arg8[%c0_22, %c0_23] : memref<1x200xf32, #tpu.memory_space<vmem>>, vector<1x200xf32>
    %43 = vector.broadcast %42 : vector<1x200xf32> to vector<16x200xf32>
    %44 = arith.addf %41, %43 : vector<16x200xf32>
    %c0_24 = arith.constant 0 : index
    %c0_25 = arith.constant 0 : index
    %45 = vector.load %arg9[%c0_24, %c0_25] : memref<16x200xf32, #tpu.memory_space<vmem>>, vector<16x200xf32>
    tpu.vector_store %arg9[%c0_24, %c0_25], %44 {strides = array<i32>} : memref<16x200xf32, #tpu.memory_space<vmem>>, vector<16x200xf32>,
    return
  }
  func.func @transform_0(%arg0: i32) -> (i32, i32) {
    %c0_i32 = arith.constant 0 : i32
    %c0_i32_0 = arith.constant 0 : i32
    return %arg0, %c0_i32 : i32, i32
  }
  func.func @transform_1(%arg0: i32) -> (i32, i32) {
    %c0_i32 = arith.constant 0 : i32
    %c0_i32_0 = arith.constant 0 : i32
    %c0_i32_1 = arith.constant 0 : i32
    return %c0_i32, %c0_i32_0 : i32, i32
  }
  func.func @transform_2(%arg0: i32) -> (i32, i32) {
    %c0_i32 = arith.constant 0 : i32
    %c0_i32_0 = arith.constant 0 : i32
    %c0_i32_1 = arith.constant 0 : i32
    return %c0_i32, %c0_i32_0 : i32, i32
  }
  func.func @transform_3(%arg0: i32) -> (i32, i32) {
    %c0_i32 = arith.constant 0 : i32
    %c0_i32_0 = arith.constant 0 : i32
    %c0_i32_1 = arith.constant 0 : i32
    return %c0_i32, %c0_i32_0 : i32, i32
  }
  func.func @transform_4(%arg0: i32) -> (i32, i32) {
    %c0_i32 = arith.constant 0 : i32
    %c0_i32_0 = arith.constant 0 : i32
    %c0_i32_1 = arith.constant 0 : i32
    return %c0_i32, %c0_i32_0 : i32, i32
  }
  func.func @transform_5(%arg0: i32) -> (i32, i32) {
    %c0_i32 = arith.constant 0 : i32
    %c0_i32_0 = arith.constant 0 : i32
    %c0_i32_1 = arith.constant 0 : i32
    return %c0_i32, %c0_i32_0 : i32, i32
  }
  func.func @transform_6(%arg0: i32) -> (i32, i32) {
    %c0_i32 = arith.constant 0 : i32
    %c0_i32_0 = arith.constant 0 : i32
    %c0_i32_1 = arith.constant 0 : i32
    return %c0_i32, %c0_i32_0 : i32, i32
  }
  func.func @transform_7(%arg0: i32) -> (i32, i32) {
    %c0_i32 = arith.constant 0 : i32
    %c0_i32_0 = arith.constant 0 : i32
    %c0_i32_1 = arith.constant 0 : i32
    return %c0_i32, %c0_i32_0 : i32, i32
  }
  func.func @transform_8(%arg0: i32) -> (i32, i32) {
    %c0_i32 = arith.constant 0 : i32
    %c0_i32_0 = arith.constant 0 : i32
    return %arg0, %c0_i32 : i32, i32
  }
}

</mosaic_0001>

<bundles_post_ra>
// kernel: tpu_custom_call.1
= control target key start
LH: loop header
LB: loop body
LE: loop exit
PB: predicated region body
PF: predicated region fallthrough
CT: control target
= control target key end

     0   :  { %13 = vsyncpa [#allocation3], 0  ;;  %s1667_s0 = inlined_call_operand.vmem [shape: f32[15,128], index: 0, kind: input, shape index: {}]   ;;  %s1668_s1 = inlined_call_operand.vmem [shape: bf16[256,256], index: 1, kind: input, shape index: {}]   ;;  %s1669_s2 = inlined_call_operand.vmem [shape: bf16[128,256], index: 2, kind: input, shape index: {}]   ;;  %s1670_s3 = inlined_call_operand.vmem [shape: f32[1,256], index: 3, kind: input, shape index: {}]   ;;  %s1671_s4 = inlined_call_operand.hbm [shape: bf16[256,256], index: 4, kind: input, shape index: {}]   ;;  %s1672_s5 = inlined_call_operand.vmem [shape: f32[1,256], index: 5, kind: input, shape index: {}]   ;;  %s1673_s6 = inlined_call_operand.vmem [shape: bf16[256,200], index: 6, kind: input, shape index: {}]   ;;  %s1674_s7 = inlined_call_operand.vmem [shape: f32[1,200], index: 7, kind: input, shape index: {}]   ;;  %s1675_s8 = inlined_call_operand.hbm [shape: f32[15,200], index: 8, kind: output, shape index: {}]  }
   0x1   :  { %14 = vsyncpa [#allocation4], 0  ;;  %s1328_s27 = smov [#allocation2]   ;;  %s1280_s9 = scalar_lea.hbm %s1671_s4, 4096 }
   0x2   :  { %s28_s28 = sshll.u32 %s1328_s27, 4  ;;  %p1281_p0 = scmp.ne.s32.totalorder %s1671_s4, %s1280_s9  ;;  %s29_s28 = int_to_ptr.vmem [resolvable:$true] %s28_s28 }
   0x3   :  { %p1284_p1 = scmp.lt.u32.totalorder %s1280_s9, %s1671_s4 }
   0x5   :  { %p1286_p2 = pnand %p1284_p1, %p1281_p0 }
   0x7   :  { %1289 = shalt.err (!%p1286_p2)
}
   0x8   :  { %s1290_s14 = scalar_lea.vmem %s29_s28, 4096  ;;  %p1295_p4 = scmp.lt.s32.totalorder %s29_s28, %s29_s28 }
   0x9   :  { %p1291_p3 = scmp.ne.s32.totalorder %s29_s28, %s1290_s14  ;;  %p1296_p5 = scmp.lt.s32.totalorder %s1290_s14, %s1290_s14 }
   0xb   :  { %p1297_p6 = por %p1296_p5, %p1295_p4 }
   0xd   :  { %p1298_p7 = pnand %p1297_p6, %p1291_p3 }
   0xf   :  { %1301 = shalt.err (!%p1298_p7)
}
  0x10   :  { %s1329_s15 = smov 128   ;;  %s1330_s16 = smov 8  }
  0x11   :  { %34 = dma.hbm_to_vmem [thread:$0]  %s1671_s4, 4096, %s29_s28, [#allocation3], %s1329_s15, %s1329_s15, %s1330_s16  }
  0x12   :  { %1324 = dma.done.wait [#allocation3], 4096  }
  0x13   :  { %1325 = vsyncadd [#allocation3], 4294963200  ;;  %v1395_v0 = vld [vmem:[%s1667_s0] sm:$0xff]  ;;  %v1400_v1 = vld [vmem:[%s1667_s0 + $0x8] sm:$0xff]  ;;  %v1331_v57 = vmov 0   ;;  %s1332_s11 = smov [#allocation5]  }
  0x14   :  { %47 = vadd.xlane.f32.xlu0 %v1395_v0  ;;  %v1108_v2 = vld [vmem:[%s1668_s1 + $0x4] ss:$8 sps:$4 sm:$0xff]   ;;  %v1110_v3 = vld [vmem:[%s1668_s1] ss:$8 sps:$4 sm:$0xff]   ;;  %v1111_v4 = vld [vmem:[%s1668_s1 + $0x14] ss:$8 sps:$4 sm:$0xff]   ;;  %450 = vmatprep.mubr.bf16.mxu1 %v1331_v57 }
  0x15   :  { %252 = vmatprep.subr.bf16.mxu0 %v1108_v2  ;;  %v1113_v5 = vld [vmem:[%s1668_s1 + $0x10] ss:$8 sps:$4 sm:$0xff]   ;;  %v1114_v6 = vld [vmem:[%s1668_s1 + $0x24] ss:$8 sps:$4 sm:$0xff]   ;;  %v1116_v7 = vld [vmem:[%s1668_s1 + $0x20] ss:$8 sps:$4 sm:$0xff]  }
  0x16   :  { %253 = vmatpush1.bf16.msra.mxu0 %v1110_v3  ;;  %v1117_v8 = vld [vmem:[%s1668_s1 + $0x34] ss:$8 sps:$4 sm:$0xff]   ;;  %v1119_v9 = vld [vmem:[%s1668_s1 + $0x30] ss:$8 sps:$4 sm:$0xff]   ;;  %v1120_v10 = vld [vmem:[%s1668_s1 + $0x44] ss:$8 sps:$4 sm:$0xff]  }
  0x17   :  { %254 = vmatprep.subr.bf16.mxu0 %v1111_v4  ;;  %v1122_v11 = vld [vmem:[%s1668_s1 + $0x40] ss:$8 sps:$4 sm:$0xff]   ;;  %v1123_v12 = vld [vmem:[%s1668_s1 + $0x54] ss:$8 sps:$4 sm:$0xff]   ;;  %v1125_v13 = vld [vmem:[%s1668_s1 + $0x50] ss:$8 sps:$4 sm:$0xff]  }
  0x18   :  { %49 = vadd.xlane.f32.xlu0 %v1400_v1  ;;  %v1126_v14 = vld [vmem:[%s1668_s1 + $0x64] ss:$8 sps:$4 sm:$0xff]   ;;  %v1128_v15 = vld [vmem:[%s1668_s1 + $0x60] ss:$8 sps:$4 sm:$0xff]   ;;  %v1129_v16 = vld [vmem:[%s1668_s1 + $0x74] ss:$8 sps:$4 sm:$0xff]  }
  0x19   :  { %v1131_v17 = vld [vmem:[%s1668_s1 + $0x70] ss:$8 sps:$4 sm:$0xff]   ;;  %v1132_v18 = vld [vmem:[%s1668_s1 + $0x84] ss:$8 sps:$4 sm:$0xff]   ;;  %v1158_v20 = vld [vmem:[%s1669_s2] ss:$8 sps:$4 sm:$0xff]  }
  0x1a   :  { %255 = vmatpush1.bf16.msra.mxu0 %v1113_v5  ;;  %v1156_v19 = vld [vmem:[%s1669_s2 + $0x4] ss:$8 sps:$4 sm:$0xff]   ;;  %v1159_v21 = vld [vmem:[%s1669_s2 + $0x14] ss:$8 sps:$4 sm:$0xff]   ;;  %v1161_v22 = vld [vmem:[%s1669_s2 + $0x10] ss:$8 sps:$4 sm:$0xff]  }
  0x1b   :  { %256 = vmatprep.subr.bf16.mxu0 %v1114_v6  ;;  %v1134_v23 = vld [vmem:[%s1668_s1 + $0x80] ss:$8 sps:$4 sm:$0xff]   ;;  %418 = vmatprep.subr.bf16.mxu1 %v1156_v19  ;;  %v1135_v24 = vld [vmem:[%s1668_s1 + $0x94] ss:$8 sps:$4 sm:$0xff]   ;;  %v1137_v25 = vld [vmem:[%s1668_s1 + $0x90] ss:$8 sps:$4 sm:$0xff]  }
  0x1c   :  { %419 = vmatpush1.bf16.msra.mxu1 %v1158_v20  ;;  %v1138_v26 = vld [vmem:[%s1668_s1 + $0xa4] ss:$8 sps:$4 sm:$0xff]   ;;  %v1140_v27 = vld [vmem:[%s1668_s1 + $0xa0] ss:$8 sps:$4 sm:$0xff]   ;;  %v1141_v28 = vld [vmem:[%s1668_s1 + $0xb4] ss:$8 sps:$4 sm:$0xff]  }
  0x1d   :  { %420 = vmatprep.subr.bf16.mxu1 %v1159_v21  ;;  %v1143_v29 = vld [vmem:[%s1668_s1 + $0xb0] ss:$8 sps:$4 sm:$0xff]   ;;  %v1144_v30 = vld [vmem:[%s1668_s1 + $0xc4] ss:$8 sps:$4 sm:$0xff]   ;;  %v1146_v31 = vld [vmem:[%s1668_s1 + $0xc0] ss:$8 sps:$4 sm:$0xff]  }
  0x1e   :  { %257 = vmatpush1.bf16.msra.mxu0 %v1116_v7  ;;  %v1147_v32 = vld [vmem:[%s1668_s1 + $0xd4] ss:$8 sps:$4 sm:$0xff]   ;;  %v1149_v33 = vld [vmem:[%s1668_s1 + $0xd0] ss:$8 sps:$4 sm:$0xff]   ;;  %v1150_v34 = vld [vmem:[%s1668_s1 + $0xe4] ss:$8 sps:$4 sm:$0xff]  }
  0x1f   :  { %258 = vmatprep.subr.bf16.mxu0 %v1117_v8  ;;  %v1152_v35 = vld [vmem:[%s1668_s1 + $0xe0] ss:$8 sps:$4 sm:$0xff]   ;;  %v1153_v36 = vld [vmem:[%s1668_s1 + $0xf4] ss:$8 sps:$4 sm:$0xff]   ;;  %v1155_v37 = vld [vmem:[%s1668_s1 + $0xf0] ss:$8 sps:$4 sm:$0xff]  }
  0x20   :  { %421 = vmatpush1.bf16.msra.mxu1 %v1161_v22  ;;  %v1162_v48 = vld [vmem:[%s1669_s2 + $0x24] ss:$8 sps:$4 sm:$0xff]   ;;  %v1164_v49 = vld [vmem:[%s1669_s2 + $0x20] ss:$8 sps:$4 sm:$0xff]   ;;  %v1165_v50 = vld [vmem:[%s1669_s2 + $0x34] ss:$8 sps:$4 sm:$0xff]  }
  0x21   :  { %422 = vmatprep.subr.bf16.mxu1 %v1162_v48  ;;  %v1167_v51 = vld [vmem:[%s1669_s2 + $0x30] ss:$8 sps:$4 sm:$0xff]   ;;  %v1168_v52 = vld [vmem:[%s1669_s2 + $0x44] ss:$8 sps:$4 sm:$0xff]   ;;  %v1170_v53 = vld [vmem:[%s1669_s2 + $0x40] ss:$8 sps:$4 sm:$0xff]  }
  0x22   :  { %259 = vmatpush1.bf16.msra.mxu0 %v1119_v9  ;;  %v1171_v54 = vld [vmem:[%s1669_s2 + $0x54] ss:$8 sps:$4 sm:$0xff]   ;;  %v1173_v55 = vld [vmem:[%s1669_s2 + $0x50] ss:$8 sps:$4 sm:$0xff]   ;;  %v1174_v56 = vld [vmem:[%s1669_s2 + $0x64] ss:$8 sps:$4 sm:$0xff]  }
  0x23   :  { %260 = vmatprep.subr.bf16.mxu0 %v1120_v10  ;;  %v1176_v58 = vld [vmem:[%s1669_s2 + $0x60] ss:$8 sps:$4 sm:$0xff]   ;;  %v1177_v59 = vld [vmem:[%s1669_s2 + $0x74] ss:$8 sps:$4 sm:$0xff]   ;;  %v1179_v60 = vld [vmem:[%s1669_s2 + $0x70] ss:$8 sps:$4 sm:$0xff]  }
  0x24   :  { %423 = vmatpush1.bf16.msra.mxu1 %v1164_v49  ;;  %v1182_v61 = vld [vmem:[#allocation2 + $0x4] ss:$8 sps:$4 sm:$0xff]   ;;  %v1183_v19 = vld [vmem:[#allocation2 + $0x10] ss:$8 sps:$4 sm:$0xff]   ;;  %v1186_v21 = vld [vmem:[#allocation2 + $0x20] ss:$8 sps:$4 sm:$0xff]  }
  0x25   :  { %424 = vmatprep.subr.bf16.mxu1 %v1165_v50  ;;  %v1188_v20 = vld [vmem:[#allocation2 + $0x24] ss:$8 sps:$4 sm:$0xff]   ;;  %v1191_v22 = vld [vmem:[#allocation2 + $0x34] ss:$8 sps:$4 sm:$0xff]   ;;  %v1228_v48 = vld [vmem:[%s1673_s6] ss:$8 sps:$4 sm:$0xff]  }
  0x26   :  { %261 = vmatpush1.bf16.msra.mxu0 %v1122_v11  ;;  %v1230_v49 = vld [vmem:[%s1673_s6 + $0x4] ss:$8 sps:$4 sm:$0xff]   ;;  %v1233_v50 = vld [vmem:[%s1673_s6 + $0x14] ss:$8 sps:$4 sm:$0xff]   ;;  %v1240_v57 = vld [vmem:[%s1673_s6 + $0x40] ss:$8 sps:$4 sm:$0xff]  }
  0x27   :  { %262 = vmatprep.subr.bf16.mxu0 %v1123_v12  ;;  %s977_s12 = sshll.u32 %s1332_s11, 4  ;;  %vm968_vm0 = vcmask 588800   ;;  %s978_s12 = int_to_ptr.vmem [resolvable:$true] %s977_s12 }
  0x28   :  { %425 = vmatpush1.bf16.msra.mxu1 %v1167_v51  ;;  %v1231_v51 = vld [vmem:[%s1673_s6 + $0x10] ss:$8 sps:$4 sm:$0xff]   ;;  %s1302_s13 = scalar_lea.vmem %s978_s12, 512  ;;  %p1307_p9 = scmp.lt.s32.totalorder %s978_s12, %s978_s12 }
  0x29   :  { %426 = vmatprep.subr.bf16.mxu1 %v1168_v52  ;;  %v1236_v52 = vld [vmem:[%s1673_s6 + $0x24] ss:$8 sps:$4 sm:$0xff]   ;;  %p1303_p8 = scmp.ne.s32.totalorder %s978_s12, %s1302_s13  ;;  %p1308_p10 = scmp.lt.s32.totalorder %s1302_s13, %s1302_s13 }
  0x2a   :  { %263 = vmatpush1.bf16.msra.mxu0 %v1125_v13 }
  0x2b   :  { %264 = vmatprep.subr.bf16.mxu0 %v1126_v14  ;;  %p1309_p11 = por %p1308_p10, %p1307_p9 }
  0x2c   :  { %427 = vmatpush1.bf16.msra.mxu1 %v1170_v53  ;;  %v1234_v53 = vld [vmem:[%s1673_s6 + $0x20] ss:$8 sps:$4 sm:$0xff]  }
  0x2d   :  { %428 = vmatprep.subr.bf16.mxu1 %v1171_v54  ;;  %v1239_v54 = vld [vmem:[%s1673_s6 + $0x34] ss:$8 sps:$4 sm:$0xff]   ;;  %p1310_p12 = pnand %p1309_p11, %p1303_p8 }
  0x2e   :  { %265 = vmatpush1.bf16.msra.mxu0 %v1128_v15 }
  0x2f   :  { %266 = vmatprep.subr.bf16.mxu0 %v1129_v16  ;;  %v1180_v16 = vld [vmem:[#allocation2] ss:$8 sps:$4 sm:$0xff]  }
  0x30   :  { %429 = vmatpush1.bf16.msra.mxu1 %v1173_v55  ;;  %v1237_v55 = vld [vmem:[%s1673_s6 + $0x30] ss:$8 sps:$4 sm:$0xff]  }
  0x31   :  { %430 = vmatprep.subr.bf16.mxu1 %v1174_v56  ;;  %v1242_v56 = vld [vmem:[%s1673_s6 + $0x44] ss:$8 sps:$4 sm:$0xff]  }
  0x32   :  { %267 = vmatpush1.bf16.msra.mxu0 %v1131_v17 }
  0x33   :  { %268 = vmatprep.subr.bf16.mxu0 %v1132_v18  ;;  %v1185_v18 = vld [vmem:[#allocation2 + $0x14] ss:$8 sps:$4 sm:$0xff]  }
  0x34   :  { %431 = vmatpush1.bf16.msra.mxu1 %v1176_v58  ;;  %v1245_v58 = vld [vmem:[%s1673_s6 + $0x54] ss:$8 sps:$4 sm:$0xff]  }
  0x35   :  { %432 = vmatprep.subr.bf16.mxu1 %v1177_v59  ;;  %v1243_v59 = vld [vmem:[%s1673_s6 + $0x50] ss:$8 sps:$4 sm:$0xff]  }
  0x36   :  { %269 = vmatpush1.bf16.msra.mxu0 %v1134_v23  ;;  %v1189_v23 = vld [vmem:[#allocation2 + $0x30] ss:$8 sps:$4 sm:$0xff]  }
  0x37   :  { %270 = vmatprep.subr.bf16.mxu0 %v1135_v24  ;;  %v1194_v24 = vld [vmem:[#allocation2 + $0x44] ss:$8 sps:$4 sm:$0xff]  }
  0x38   :  { %433 = vmatpush1.bf16.msra.mxu1 %v1179_v60  ;;  %v1248_v60 = vld [vmem:[%s1673_s6 + $0x64] ss:$8 sps:$4 sm:$0xff]  }
  0x39   :  { %671 = vmatprep.subr.bf16.mxu1 %v1182_v61  ;;  %v1246_v61 = vld [vmem:[%s1673_s6 + $0x60] ss:$8 sps:$4 sm:$0xff]  }
  0x3a   :  { %271 = vmatpush1.bf16.msra.mxu0 %v1137_v25  ;;  %v1192_v25 = vld [vmem:[#allocation2 + $0x40] ss:$8 sps:$4 sm:$0xff]  }
  0x3b   :  { %272 = vmatprep.subr.bf16.mxu0 %v1138_v26  ;;  %v1197_v26 = vld [vmem:[#allocation2 + $0x54] ss:$8 sps:$4 sm:$0xff]  }
  0x3e   :  { %273 = vmatpush1.bf16.msra.mxu0 %v1140_v27  ;;  %v1195_v27 = vld [vmem:[#allocation2 + $0x50] ss:$8 sps:$4 sm:$0xff]  }
  0x3f   :  { %274 = vmatprep.subr.bf16.mxu0 %v1141_v28  ;;  %v1200_v28 = vld [vmem:[#allocation2 + $0x64] ss:$8 sps:$4 sm:$0xff]  }
  0x42   :  { %275 = vmatpush1.bf16.msra.mxu0 %v1143_v29  ;;  %v1198_v29 = vld [vmem:[#allocation2 + $0x60] ss:$8 sps:$4 sm:$0xff]  }
  0x43   :  { %276 = vmatprep.subr.bf16.mxu0 %v1144_v30  ;;  %v1203_v30 = vld [vmem:[#allocation2 + $0x74] ss:$8 sps:$4 sm:$0xff]  }
  0x46   :  { %277 = vmatpush1.bf16.msra.mxu0 %v1146_v31  ;;  %v1201_v31 = vld [vmem:[#allocation2 + $0x70] ss:$8 sps:$4 sm:$0xff]  }
  0x47   :  { %278 = vmatprep.subr.bf16.mxu0 %v1147_v32  ;;  %v1206_v32 = vld [vmem:[#allocation2 + $0x84] ss:$8 sps:$4 sm:$0xff]  }
  0x4a   :  { %279 = vmatpush1.bf16.msra.mxu0 %v1149_v33  ;;  %v1204_v33 = vld [vmem:[#allocation2 + $0x80] ss:$8 sps:$4 sm:$0xff]  }
  0x4b   :  { %280 = vmatprep.subr.bf16.mxu0 %v1150_v34  ;;  %v1209_v34 = vld [vmem:[#allocation2 + $0x94] ss:$8 sps:$4 sm:$0xff]  }
  0x4e   :  { %281 = vmatpush1.bf16.msra.mxu0 %v1152_v35  ;;  %v1207_v35 = vld [vmem:[#allocation2 + $0x90] ss:$8 sps:$4 sm:$0xff]  }
  0x4f   :  { %282 = vmatprep.subr.bf16.mxu0 %v1153_v36  ;;  %v1212_v36 = vld [vmem:[#allocation2 + $0xa4] ss:$8 sps:$4 sm:$0xff]  }
  0x52   :  { %283 = vmatpush1.bf16.msra.mxu0 %v1155_v37  ;;  %v1210_v37 = vld [vmem:[#allocation2 + $0xa0] ss:$8 sps:$4 sm:$0xff]  }
  0x53   :  { %924 = vmatprep.subr.bf16.mxu0 %v1230_v49 }
  0xa1   :  { %v48_v38 = vpop.xlane.xlu0 %47 }
  0xa2   :  { %v52_v39 = vmul.f32 0.0078125, %v48_v38  ;;  %v1215_v38 = vld [vmem:[#allocation2 + $0xb4] ss:$8 sps:$4 sm:$0xff]  }
  0xa4   :  { %v54_v41 = vsub.f32 %v1395_v0, %v52_v39  ;;  %v1213_v39 = vld [vmem:[#allocation2 + $0xb0] ss:$8 sps:$4 sm:$0xff]  }
  0xa5   :  { %v50_v40 = vpop.xlane.xlu0 %49 }
  0xa6   :  { %v53_v42 = vmul.f32 0.0078125, %v50_v40  ;;  %v56_v44 = vmul.f32 %v54_v41, %v54_v41  ;;  %v1218_v40 = vld [vmem:[#allocation2 + $0xc4] ss:$8 sps:$4 sm:$0xff]  }
  0xa8   :  { %v55_v43 = vsub.f32 %v1400_v1, %v53_v42  ;;  %v1221_v42 = vld [vmem:[#allocation2 + $0xd4] ss:$8 sps:$4 sm:$0xff]  }
  0xaa   :  { %v57_v45 = vmul.f32 %v55_v43, %v55_v43  ;;  %v58_v47 = vpack.c.bf16 %v55_v43, %v54_v41 }
  0xac   :  { %v59_v46 = vpack.c.bf16 %v57_v45, %v56_v44  ;;  %v1224_v44 = vld [vmem:[#allocation2 + $0xe4] ss:$8 sps:$4 sm:$0xff]   ;;  %v1222_v45 = vld [vmem:[#allocation2 + $0xe0] ss:$8 sps:$4 sm:$0xff]  }
  0xae   :  { %284 = vmatprep.mubr.bf16.mxu0 %v59_v46  ;;  %v1227_v46 = vld [vmem:[#allocation2 + $0xf4] ss:$8 sps:$4 sm:$0xff]  }
  0xaf   :  { %285 = vmatmul.mubr.bf16.vlgmr.msra.gmra.mrb[0].mxu0 %v58_v47  ;;  %v1225_v47 = vld [vmem:[#allocation2 + $0xf0] ss:$8 sps:$4 sm:$0xff]  }
  0xb0   :  { %925 = vmatpush1.bf16.msra.mxu0 %v1228_v48 }
  0xb1   :  { %926 = vmatprep.subr.bf16.mxu0 %v1233_v50 }
  0xb4   :  { %927 = vmatpush1.bf16.msra.mxu0 %v1231_v51 }
  0xb5   :  { %928 = vmatprep.subr.bf16.mxu0 %v1236_v52 }
  0xb8   :  { %929 = vmatpush1.bf16.msra.mxu0 %v1234_v53 }
  0xb9   :  { %930 = vmatprep.subr.bf16.mxu0 %v1239_v54  ;;  %v752_v54 = vld [vmem:[%s1674_s7] sm:$0x3] }
  0xbc   :  { %931 = vmatpush1.bf16.msra.mxu0 %v1237_v55 }
  0xbd   :  { %932 = vmatprep.subr.bf16.mxu0 %v1242_v56 }
  0xc0   :  { %933 = vmatpush1.bf16.msra.mxu0 %v1240_v57 }
  0xc1   :  { %934 = vmatprep.subr.bf16.mxu0 %v1245_v58 }
  0xc4   :  { %935 = vmatpush1.bf16.msra.mxu0 %v1243_v59 }
  0xc5   :  { %936 = vmatprep.subr.bf16.mxu0 %v1248_v60 }
  0xc8   :  { %937 = vmatpush1.bf16.msra.mxu0 %v1246_v61 }
 0x182   :  { %v286_v62 = vpop.f32.mrb[0].mxu0 }
 0x183   :  { %v295_v63 = vmul.f32 %v286_v62, %v286_v62  ;;  %v288_v0 = vpop.f32.mrb[1].mxu0  ;;  %v301_v10 = vsub.f32 %v54_v41, %v286_v62  ;;  %v1216_v41 = vld [vmem:[#allocation2 + $0xc0] ss:$8 sps:$4 sm:$0xff]   ;;  %v1251_v62 = vld [vmem:[%s1673_s6 + $0x74] ss:$8 sps:$4 sm:$0xff]  }
 0x184   :  { %v290_v1 = vpop.f32.mrb[2].mxu0  ;;  %938 = vmatprep.subr.bf16.mxu0 %v1251_v62 }
 0x185   :  { %v297_v2 = vsub.f32 %v288_v0, %v295_v63  ;;  %v296_v3 = vmul.f32 %v290_v1, %v290_v1  ;;  %v292_v4 = vpop.f32.mrb[3].mxu0  ;;  %v302_v12 = vsub.f32 %v55_v43, %v290_v1  ;;  %v1219_v43 = vld [vmem:[#allocation2 + $0xd0] ss:$8 sps:$4 sm:$0xff]   ;;  %v1254_v0 = vld [vmem:[%s1673_s6 + $0x84] ss:$8 sps:$4 sm:$0xff]  }
 0x186   :  { %v1249_v63 = vld [vmem:[%s1673_s6 + $0x70] ss:$8 sps:$4 sm:$0xff]   ;;  %v1252_v1 = vld [vmem:[%s1673_s6 + $0x80] ss:$8 sps:$4 sm:$0xff]  }
 0x187   :  { %v299_v5 = vmax.f32 %v297_v2, 0.0  ;;  %v298_v6 = vsub.f32 %v292_v4, %v296_v3  ;;  %939 = vmatpush1.bf16.msra.mxu0 %v1249_v63  ;;  %v1257_v2 = vld [vmem:[%s1673_s6 + $0x94] ss:$8 sps:$4 sm:$0xff]   ;;  %v1255_v3 = vld [vmem:[%s1673_s6 + $0x90] ss:$8 sps:$4 sm:$0xff]  }
 0x188   :  { %940 = vmatprep.subr.bf16.mxu0 %v1254_v0  ;;  %v1260_v4 = vld [vmem:[%s1673_s6 + $0xa4] ss:$8 sps:$4 sm:$0xff]  }
 0x189   :  { %v303_v7 = vadd.f32 1e-05, %v299_v5  ;;  %v300_v8 = vmax.f32 %v298_v6, 0.0  ;;  %v1258_v5 = vld [vmem:[%s1673_s6 + $0xa0] ss:$8 sps:$4 sm:$0xff]  }
 0x18a   :  { %v1263_v6 = vld [vmem:[%s1673_s6 + $0xb4] ss:$8 sps:$4 sm:$0xff]  }
 0x18b   :  { %1276 = vrsqrt.f32 %v303_v7  ;;  %v304_v9 = vadd.f32 1e-05, %v300_v8  ;;  %941 = vmatpush1.bf16.msra.mxu0 %v1252_v1  ;;  %v1261_v7 = vld [vmem:[%s1673_s6 + $0xb0] ss:$8 sps:$4 sm:$0xff]   ;;  %v1266_v8 = vld [vmem:[%s1673_s6 + $0xc4] ss:$8 sps:$4 sm:$0xff]  }
 0x18c   :  { %942 = vmatprep.subr.bf16.mxu0 %v1257_v2 }
 0x18d   :  { %1278 = vrsqrt.f32 %v304_v9  ;;  %v1264_v9 = vld [vmem:[%s1673_s6 + $0xc0] ss:$8 sps:$4 sm:$0xff]  }
 0x18f   :  { %943 = vmatpush1.bf16.msra.mxu0 %v1255_v3 }
 0x190   :  { %944 = vmatprep.subr.bf16.mxu0 %v1260_v4 }
 0x193   :  { %945 = vmatpush1.bf16.msra.mxu0 %v1258_v5 }
 0x194   :  { %946 = vmatprep.subr.bf16.mxu0 %v1263_v6 }
 0x195   :  { %v1277_v11 = vpop.eup %1276 }
 0x196   :  { %v307_v13 = vmul.f32 %v1277_v11, %v301_v10  ;;  %v1269_v10 = vld [vmem:[%s1673_s6 + $0xd4] ss:$8 sps:$4 sm:$0xff]   ;;  %v1267_v11 = vld [vmem:[%s1673_s6 + $0xd0] ss:$8 sps:$4 sm:$0xff]  }
 0x197   :  { %v1279_v14 = vpop.eup %1278  ;;  %947 = vmatpush1.bf16.msra.mxu0 %v1261_v7 }
 0x198   :  { %v308_v15 = vmul.f32 %v1279_v14, %v302_v12  ;;  %948 = vmatprep.subr.bf16.mxu0 %v1266_v8  ;;  %v328_v12 = vlaneseq }
 0x19a   :  { %v309_v17 = vpack.c.bf16 %v308_v15, %v307_v13  ;;  %v329_v13 = vshrl.u32 %v328_v12, 7  ;;  %v326_v15 = vld [vmem:[%s1670_s3] sm:$0x3] }
 0x19b   :  { %949 = vmatpush1.bf16.msra.mxu0 %v1264_v9 }
 0x19c   :  { %451 = vmatmul.mubr.bf16.vlgmr.msra.gmra.mrb[0].mxu1 %v309_v17  ;;  %950 = vmatprep.subr.bf16.mxu0 %v1269_v10  ;;  %v330_v14 = vsub.s32 0, %v329_v13 }
 0x19d   :  { %672 = vmatpush1.bf16.msra.mxu1 %v1180_v16  ;;  %v334_v16 = vsub.s32 1, %v329_v13 }
 0x19e   :  { %673 = vmatprep.subr.bf16.mxu1 %v1185_v18  ;;  %v331_v17 = vrot.slane %v326_v15, %v330_v14  ;;  %v757_v55 = vrot.slane %v752_v54, %v330_v14 }
 0x19f   :  { %951 = vmatpush1.bf16.msra.mxu0 %v1267_v11  ;;  %v335_v18 = vrot.slane %v326_v15, %v334_v16  ;;  %v761_v56 = vrot.slane %v752_v54, %v334_v16 }
 0x1a1   :  { %674 = vmatpush1.bf16.msra.mxu1 %v1183_v19 }
 0x1a2   :  { %675 = vmatprep.subr.bf16.mxu1 %v1188_v20 }
 0x1a5   :  { %676 = vmatpush1.bf16.msra.mxu1 %v1186_v21 }
 0x1a6   :  { %677 = vmatprep.subr.bf16.mxu1 %v1191_v22 }
 0x1a9   :  { %678 = vmatpush1.bf16.msra.mxu1 %v1189_v23 }
 0x1aa   :  { %679 = vmatprep.subr.bf16.mxu1 %v1194_v24 }
 0x1ad   :  { %680 = vmatpush1.bf16.msra.mxu1 %v1192_v25 }
 0x1ae   :  { %681 = vmatprep.subr.bf16.mxu1 %v1197_v26 }
 0x1b1   :  { %682 = vmatpush1.bf16.msra.mxu1 %v1195_v27 }
 0x1b2   :  { %683 = vmatprep.subr.bf16.mxu1 %v1200_v28 }
 0x1b5   :  { %684 = vmatpush1.bf16.msra.mxu1 %v1198_v29 }
 0x1b6   :  { %685 = vmatprep.subr.bf16.mxu1 %v1203_v30 }
 0x1b9   :  { %686 = vmatpush1.bf16.msra.mxu1 %v1201_v31 }
 0x1ba   :  { %687 = vmatprep.subr.bf16.mxu1 %v1206_v32 }
 0x1bd   :  { %688 = vmatpush1.bf16.msra.mxu1 %v1204_v33  ;;  %v1272_v33 = vld [vmem:[%s1673_s6 + $0xe4] ss:$8 sps:$4 sm:$0xff]  }
 0x1be   :  { %689 = vmatprep.subr.bf16.mxu1 %v1209_v34  ;;  %v1270_v34 = vld [vmem:[%s1673_s6 + $0xe0] ss:$8 sps:$4 sm:$0xff]   ;;  %952 = vmatprep.subr.bf16.mxu0 %v1272_v33 }
 0x1bf   :  { %953 = vmatpush1.bf16.msra.mxu0 %v1270_v34 }
 0x1c1   :  { %690 = vmatpush1.bf16.msra.mxu1 %v1207_v35  ;;  %v1275_v35 = vld [vmem:[%s1673_s6 + $0xf4] ss:$8 sps:$4 sm:$0xff]  }
 0x1c2   :  { %691 = vmatprep.subr.bf16.mxu1 %v1212_v36  ;;  %v1273_v36 = vld [vmem:[%s1673_s6 + $0xf0] ss:$8 sps:$4 sm:$0xff]   ;;  %954 = vmatprep.subr.bf16.mxu0 %v1275_v35 }
 0x1c3   :  { %955 = vmatpush1.bf16.msra.mxu0 %v1273_v36 }
 0x1c5   :  { %692 = vmatpush1.bf16.msra.mxu1 %v1210_v37  ;;  %v499_v37 = vld [vmem:[%s1672_s5] sm:$0x3] }
 0x1c6   :  { %693 = vmatprep.subr.bf16.mxu1 %v1215_v38  ;;  %v504_v38 = vrot.slane %v499_v37, %v330_v14 }
 0x1c9   :  { %694 = vmatpush1.bf16.msra.mxu1 %v1213_v39  ;;  %v508_v39 = vrot.slane %v499_v37, %v334_v16 }
 0x1ca   :  { %695 = vmatprep.subr.bf16.mxu1 %v1218_v40 }
 0x1cd   :  { %696 = vmatpush1.bf16.msra.mxu1 %v1216_v41 }
 0x1ce   :  { %697 = vmatprep.subr.bf16.mxu1 %v1221_v42 }
 0x1d1   :  { %698 = vmatpush1.bf16.msra.mxu1 %v1219_v43 }
 0x1d2   :  { %699 = vmatprep.subr.bf16.mxu1 %v1224_v44 }
 0x1d5   :  { %700 = vmatpush1.bf16.msra.mxu1 %v1222_v45 }
 0x1d6   :  { %701 = vmatprep.subr.bf16.mxu1 %v1227_v46 }
 0x1d9   :  { %702 = vmatpush1.bf16.msra.mxu1 %v1225_v47 }
 0x26f   :  { %v452_v19 = vpop.f32.mrb[0].mxu1 }
 0x270   :  { %v453_v20 = vadd.f32 %v452_v19, %v331_v17  ;;  %v454_v21 = vpop.f32.mrb[1].mxu1 }
 0x271   :  { %v455_v22 = vadd.f32 %v454_v21, %v335_v18  ;;  %v456_v23 = vpop.f32.mrb[2].mxu1 }
 0x272   :  { %v457_v24 = vadd.f32 %v456_v23, %v331_v17  ;;  %v458_v25 = vpop.f32.mrb[3].mxu1  ;;  %v461_v27 = vmax.f32 %v453_v20, 0.0 }
 0x273   :  { %v459_v26 = vadd.f32 %v458_v25, %v335_v18  ;;  %v462_v29 = vmax.f32 %v455_v22, 0.0 }
 0x274   :  { %v463_v28 = vmax.f32 %v457_v24, 0.0 }
 0x275   :  { %v464_v30 = vmax.f32 %v459_v26, 0.0 }
 0x276   :  { %v465_v31 = vpack.c.bf16 %v463_v28, %v461_v27 }
 0x277   :  { %v466_v32 = vpack.c.bf16 %v464_v30, %v462_v29 }
 0x279   :  { %703 = vmatprep.mubr.bf16.mxu1 %v466_v32 }
 0x27a   :  { %704 = vmatmul.mubr.bf16.vlgmr.msra.gmra.mrb[4].mxu1 %v465_v31 }
 0x34d   :  { %v705_v40 = vpop.f32.mrb[4].mxu1 }
 0x34e   :  { %v706_v41 = vadd.f32 %v705_v40, %v504_v38  ;;  %v707_v42 = vpop.f32.mrb[5].mxu1 }
 0x34f   :  { %v708_v43 = vadd.f32 %v707_v42, %v508_v39  ;;  %v709_v44 = vpop.f32.mrb[6].mxu1 }
 0x350   :  { %v710_v45 = vadd.f32 %v709_v44, %v504_v38  ;;  %v711_v46 = vpop.f32.mrb[7].mxu1  ;;  %v714_v48 = vmax.f32 %v706_v41, 0.0 }
 0x351   :  { %v712_v47 = vadd.f32 %v711_v46, %v508_v39  ;;  %v715_v50 = vmax.f32 %v708_v43, 0.0 }
 0x352   :  { %v716_v49 = vmax.f32 %v710_v45, 0.0 }
 0x353   :  { %v717_v51 = vmax.f32 %v712_v47, 0.0 }
 0x354   :  { %v718_v52 = vpack.c.bf16 %v716_v49, %v714_v48 }
 0x355   :  { %v719_v53 = vpack.c.bf16 %v717_v51, %v715_v50 }
 0x357   :  { %956 = vmatprep.mubr.bf16.mxu0 %v719_v53 }
 0x358   :  { %957 = vmatmul.mubr.bf16.vlgmr.msra.gmra.mrb[4].mxu0 %v718_v52 }
 0x42b   :  { %v958_v57 = vpop.f32.mrb[4].mxu0 }
 0x42c   :  { %v959_v58 = vadd.f32 %v958_v57, %v757_v55  ;;  %v960_v59 = vpop.f32.mrb[5].mxu0 }
 0x42d   :  { %v961_v60 = vadd.f32 %v960_v59, %v761_v56  ;;  %v962_v61 = vpop.f32.mrb[6].mxu0 }
 0x42e   :  { %967 = vst [vmem:[#allocation5] sm:$0xff] %v959_v58  ;;  %v963_v62 = vadd.f32 %v962_v61, %v757_v55  ;;  %v964_v63 = vpop.f32.mrb[7].mxu0 }
 0x42f   :  { %969 = vst.msk [vmem:[#allocation5 + $0x8] sm:$0xff] %vm968_vm0, %v961_v60  ;;  %v965_v0 = vadd.f32 %v964_v63, %v761_v56 }
 0x430   :  { %970 = vst [vmem:[#allocation5 + $0x10] sm:$0xff] %v963_v62 }
 0x431   :  { %971 = vst.msk [vmem:[#allocation5 + $0x18] sm:$0xff] %vm968_vm0, %v965_v0 }
 0x432   :  { %1313 = shalt.err (!%p1310_p12)
}
 0x433   :  { %s1314_s15 = scalar_lea.hbm %s1675_s8, 512 }
 0x434   :  { %p1315_p13 = scmp.ne.s32.totalorder %s1675_s8, %s1314_s15  ;;  %p1318_p0 = scmp.lt.u32.totalorder %s1314_s15, %s1675_s8 }
 0x436   :  { %p1320_p1 = pnand %p1318_p0, %p1315_p13 }
 0x438   :  { %1323 = shalt.err (!%p1320_p1)
}
 0x439   :  { %s1333_s20 = smov 256   ;;  %s1334_s21 = smov 16  }
 0x43a   :  { %983 = dma.vmem_to_hbm [thread:$0]  %s978_s12, 512, %s1675_s8, [#allocation4], %s1333_s20, %s1333_s20, %s1334_s21  }
 0x43b   :  { %1326 = dma.done.wait [#allocation4], 512  }
 0x43c   :  { %1327 = vsyncadd [#allocation4], 4294966784 }
 0x43d   :  { %987 = vsyncpa [#allocation3], 1 }
 0x43e   :  { %988 = vsyncpa [#allocation4], 1 }

</bundles_post_ra>
